<compile_context>
chip_gen: v5e
topology: v5e:2x2
jax: 0.10.0
libtpu: 0.0.40
codegen_flags: <defaults>
</compile_context>

<pallas_src>
import functools

import jax
import jax.numpy as jnp
from jax.experimental import pallas as pl
from jax.experimental.pallas import tpu as pltpu


def _round_up(v, m):
    return (v + m - 1) // m * m


def lbconv2d_kernel(x_ref, wb_ref, b_ref, o_ref):
    # x_ref : (block_m, K_pad)     row = (batch, out-row), col = (dy, win, cin)
    # wb_ref: (K_pad, ncol_pad)    fused band weights (3x3 conv with 1x1 folded in)
    # b_ref : (1, ncol_pad)        1x1-conv bias tiled over output columns (wout, c2)
    # o_ref : (block_m, ncol_pad)  output rows, lane-dense / unmasked stores
    acc = jnp.dot(x_ref[...], wb_ref[...],
                  preferred_element_type=jnp.float32,
                  precision=jax.lax.Precision.HIGHEST)
    o_ref[...] = (acc + b_ref[...]).astype(o_ref.dtype)


def lbconv2d_prepare(w1_oihw, w2_oi, b2, H, W):
    """Weight-only precompute. Call ONCE per (weights, H, W) and reuse.

    Returns (w_band, bias_row):
      w_band  : (K_pad, ncol_pad)  K = 3*W*Cin padded to 128, cols = Wo*C2 padded to 128
      bias_row: (1, ncol_pad)
    """
    Cin = w1_oihw.shape[1]
    C2 = w2_oi.shape[0]
    Ho, Wo = H - 2, W - 2

    # Fold the learnable 1x1 conv into the fixed ternary 3x3 weights:
    #   w_eff[dy, dx, cin, c2] = sum_c1 w1[c1, cin, dy, dx] * w2[c2, c1]
    w1t = jnp.transpose(w1_oihw, (2, 3, 1, 0))                # (3, 3, Cin, C1)
    w2t = jnp.transpose(w2_oi, (1, 0))                        # (C1, C2)
    w_eff = jnp.einsum("yxic,co->yxio", w1t, w2t,
                       precision=jax.lax.Precision.HIGHEST)   # (3, 3, Cin, C2)

    # Per-dy band matrices: row (win*Cin + cin), col (wout*C2 + c2);
    # nonzero iff win - wout == dx in {0,1,2}.  Then concatenate the three dy
    # bands along K so the kernel issues a single matmul with K = 3*W*Cin.
    bands = []
    for dy in range(3):
        band = sum(jnp.kron(jnp.eye(W, Wo, k=-dx, dtype=w_eff.dtype), w_eff[dy, dx])
                   for dx in range(3))                        # (W*Cin, Wo*C2)
        bands.append(band)
    w_band = jnp.concatenate(bands, axis=0)                   # (3*W*Cin, Wo*C2)
    bias_row = jnp.tile(b2, Wo).reshape(1, Wo * C2)           # (1, Wo*C2)

    # Lane-align K and the output columns (zero pad; sliced off in the wrapper).
    K = 3 * W * Cin
    ncol = Wo * C2
    K_pad = _round_up(K, 128)
    ncol_pad = _round_up(ncol, 128)
    w_band = jnp.pad(w_band, ((0, K_pad - K), (0, ncol_pad - ncol)))
    bias_row = jnp.pad(bias_row, ((0, 0), (0, ncol_pad - ncol)))
    return w_band, bias_row


def lbconv2d_apply(x_nchw, w_band, bias_row, C2, block_m=None):
    """Forward given precomputed band weights.  x_nchw: (N, Cin, H, W) f32."""
    N, Cin, H, W = x_nchw.shape
    Ho, Wo = H - 2, W - 2
    K = 3 * W * Cin
    K_pad, ncol_pad = w_band.shape
    ncol = Wo * C2
    Ho_pad = _round_up(Ho, 8)        # sublane-aligned output rows

    # ---------- input layout glue (wrapper; cheap vs. conv compute) ----------
    # NHWC rows flattened as (W, Cin), then the 3 dy-shifted row windows are
    # stacked along K so the kernel does one K = 3*W*Cin matmul per step.
    x_rows = jnp.transpose(x_nchw, (0, 2, 3, 1)).reshape(N, H, W * Cin)
    x_stack = jnp.concatenate([x_rows[:, dy:dy + Ho, :] for dy in range(3)],
                              axis=-1)                        # (N, Ho, 3*W*Cin)
    x_stack = jnp.pad(x_stack, ((0, 0), (0, Ho_pad - Ho), (0, K_pad - K)))
    m_rows = N * Ho_pad
    x2d = x_stack.reshape(m_rows, K_pad)                      # fuse batch & row dims

    # ---------- M row-strip grid ----------
    if block_m is None:
        block_m = min(256, _round_up(m_rows, 8))
        # keep >= 2 grid steps when possible so v7x megacore splits the work
        if block_m >= m_rows and m_rows > 8:
            block_m = max(8, _round_up(m_rows // 2, 8))
    m_pad = _round_up(m_rows, block_m)
    if m_pad != m_rows:
        x2d = jnp.pad(x2d, ((0, m_pad - m_rows), (0, 0)))
    grid_m = m_pad // block_m

    out2d = pl.pallas_call(
        lbconv2d_kernel,
        out_shape=jax.ShapeDtypeStruct((m_pad, ncol_pad), x_nchw.dtype),
        grid=(grid_m,),
        in_specs=[
            pl.BlockSpec((block_m, K_pad), lambda m: (m, 0)),
            pl.BlockSpec((K_pad, ncol_pad), lambda m: (0, 0)),   # resident weights
            pl.BlockSpec((1, ncol_pad), lambda m: (0, 0)),       # resident bias
        ],
        out_specs=pl.BlockSpec((block_m, ncol_pad), lambda m: (m, 0)),
        compiler_params=pltpu.CompilerParams(
            dimension_semantics=("parallel",)),
    )(x2d, w_band, bias_row)

    # (m_pad, ncol_pad) -> (N, Ho, Wo, C2) -> NCHW (padded rows/cols sliced off)
    out = out2d[:m_rows].reshape(N, Ho_pad, ncol_pad)[:, :Ho, :ncol]
    out = out.reshape(N, Ho, Wo, C2)
    return jnp.transpose(out, (0, 3, 1, 2))


def lbconv2d(x_nchw, w1_oihw, w2_oi, b2, block_m=None):
    """Convenience one-shot API (rebuilds the band weights every call)."""
    w_band, bias_row = lbconv2d_prepare(w1_oihw, w2_oi, b2,
                                        x_nchw.shape[2], x_nchw.shape[3])
    return lbconv2d_apply(x_nchw, w_band, bias_row, w2_oi.shape[0],
                          block_m=block_m)


if __name__ == "__main__":
    key = jax.random.PRNGKey(0)
    k_x, k_b1, k_b2, k_w2, k_bias = jax.random.split(key, 5)

    # small shapes consistent with the module's forward
    N, Cin, H, W = 2, 4, 16, 16
    C1 = 8            # out_channels (also the 1x1 conv's in/out channels)
    percent = 0.2

    x = jax.random.normal(k_x, (N, Cin, H, W), jnp.float32)

    # fixed local-binary weights: bernoulli(p) + bernoulli(p) * (-1) -> {-1, 0, 1}
    bern_a = jax.random.bernoulli(k_b1, percent, (C1, Cin, 3, 3)).astype(jnp.float32)
    bern_b = jax.random.bernoulli(k_b2, percent, (C1, Cin, 3, 3)).astype(jnp.float32)
    w1 = bern_a - bern_b

    # learnable 1x1 conv params, deterministic init (PyTorch-style uniform bound)
    bound = 1.0 / (C1 ** 0.5)
    w2 = jax.random.uniform(k_w2, (C1, C1), jnp.float32, -bound, bound)
    b2 = jax.random.uniform(k_bias, (C1,), jnp.float32, -bound, bound)

    # Weight-only precompute hoisted out of the per-forward path (done once).
    w_band, bias_row = lbconv2d_prepare(w1, w2, b2, H, W)
    w_band = jax.block_until_ready(w_band)

    apply_fn = jax.jit(functools.partial(lbconv2d_apply, C2=C1))
    out = apply_fn(x, w_band, bias_row)
    out = jax.block_until_ready(out)
    assert out.shape == (N, C1, H - 2, W - 2)

    # pure-JAX reference (same math): conv3x3 valid, no bias -> conv1x1 + bias
    ref = jax.lax.conv_general_dilated(
        x, w1, (1, 1), "VALID", dimension_numbers=("NCHW", "OIHW", "NCHW"),
        precision=jax.lax.Precision.HIGHEST)
    ref = jax.lax.conv_general_dilated(
        ref, w2.reshape(C1, C1, 1, 1), (1, 1), "VALID",
        dimension_numbers=("NCHW", "OIHW", "NCHW"),
        precision=jax.lax.Precision.HIGHEST)
    ref = ref + b2.reshape(1, C1, 1, 1)
    assert jnp.allclose(out, ref, atol=1e-4, rtol=1e-4)

    # convenience path (prepare + apply fused) must agree too
    out2 = jax.block_until_ready(lbconv2d(x, w1, w2, b2))
    assert jnp.allclose(out2, ref, atol=1e-4, rtol=1e-4)

    print("KERNEL_OK")
</pallas_src>

<mosaic_0001>
module attributes {stable_mosaic.version = 11 : i64} {
  func.func @lbconv2d_kernel(%arg0: i32, %arg1: memref<16x256xf32, #tpu.memory_space<vmem>>, %arg2: memref<256x128xf32, #tpu.memory_space<vmem>>, %arg3: memref<1x128xf32, #tpu.memory_space<vmem>>, %arg4: memref<16x128xf32, #tpu.memory_space<vmem>>) attributes {dimension_semantics = [#tpu.dimension_semantics<parallel>], iteration_bounds = array<i64: 2>, scalar_prefetch = 0 : i64, scratch_operands = 0 : i64, tpu.core_type = #tpu.core_type<tc>, window_params = [{transform_indices = @transform_0, window_bounds = array<i64: 16, 256>}, {pipeline_mode = #tpu.pipeline_mode<synchronous>, transform_indices = @transform_1, window_bounds = array<i64: 256, 128>}, {pipeline_mode = #tpu.pipeline_mode<synchronous>, transform_indices = @transform_2, window_bounds = array<i64: 1, 128>}, {transform_indices = @transform_3, window_bounds = array<i64: 16, 128>}]} {
    %c0 = arith.constant 0 : index
    %c0_0 = arith.constant 0 : index
    %0 = vector.load %arg1[%c0, %c0_0] : memref<16x256xf32, #tpu.memory_space<vmem>>, vector<16x256xf32>
    %c0_1 = arith.constant 0 : index
    %c0_2 = arith.constant 0 : index
    %1 = vector.load %arg2[%c0_1, %c0_2] : memref<256x128xf32, #tpu.memory_space<vmem>>, vector<256x128xf32>
    %cst = arith.constant dense<0.000000e+00> : vector<16x128xf32>
    %2 = tpu.matmul %0, %1, %cst {dimension_numbers = #tpu.dot_dimension_numbers<[1], [0], [0], [1], [0, 0, 1, 1], [], []>, precision = #tpu.contract_precision<fp32>} : vector<16x256xf32>, vector<256x128xf32>, vector<16x128xf32> -> vector<16x128xf32>
    %c0_3 = arith.constant 0 : index
    %c0_4 = arith.constant 0 : index
    %3 = vector.load %arg3[%c0_3, %c0_4] : memref<1x128xf32, #tpu.memory_space<vmem>>, vector<1x128xf32>
    %4 = vector.broadcast %3 : vector<1x128xf32> to vector<16x128xf32>
    %5 = arith.addf %2, %4 : vector<16x128xf32>
    %c0_5 = arith.constant 0 : index
    %c0_6 = arith.constant 0 : index
    %6 = vector.load %arg4[%c0_5, %c0_6] : memref<16x128xf32, #tpu.memory_space<vmem>>, vector<16x128xf32>
    tpu.vector_store %arg4[%c0_5, %c0_6], %5 {strides = array<i32>} : memref<16x128xf32, #tpu.memory_space<vmem>>, vector<16x128xf32>,
    return
  }
  func.func @transform_0(%arg0: i32) -> (i32, i32) {
    %c0_i32 = arith.constant 0 : i32
    %c0_i32_0 = arith.constant 0 : i32
    return %arg0, %c0_i32 : i32, i32
  }
  func.func @transform_1(%arg0: i32) -> (i32, i32) {
    %c0_i32 = arith.constant 0 : i32
    %c0_i32_0 = arith.constant 0 : i32
    %c0_i32_1 = arith.constant 0 : i32
    return %c0_i32, %c0_i32_0 : i32, i32
  }
  func.func @transform_2(%arg0: i32) -> (i32, i32) {
    %c0_i32 = arith.constant 0 : i32
    %c0_i32_0 = arith.constant 0 : i32
    %c0_i32_1 = arith.constant 0 : i32
    return %c0_i32, %c0_i32_0 : i32, i32
  }
  func.func @transform_3(%arg0: i32) -> (i32, i32) {
    %c0_i32 = arith.constant 0 : i32
    %c0_i32_0 = arith.constant 0 : i32
    return %arg0, %c0_i32 : i32, i32
  }
}

</mosaic_0001>

<bundles_post_ra>
// kernel: lbconv2d_apply.1
= control target key start
LH: loop header
LB: loop body
LE: loop exit
PB: predicated region body
PF: predicated region fallthrough
CT: control target
= control target key end

     0   :  { %s1069_s12 = smov 0   ;;  %s1730_s0 = inlined_call_operand.vmem [shape: f32[32,256], index: 0, kind: input, shape index: {}]   ;;  %s1731_s1 = inlined_call_operand.vmem [shape: f32[256,128], index: 1, kind: input, shape index: {}]   ;;  %s1732_s2 = inlined_call_operand.vmem [shape: f32[1,128], index: 2, kind: input, shape index: {}]   ;;  %s1733_s3 = inlined_call_operand.vmem [shape: f32[32,128], index: 3, kind: output, shape index: {}]  }
   0x1 LB: > { %s1019_s13 = sadd.s32 4294967295, %s1047_s12   ;;  %p1023_p0 = scmp.ge.s32.totalorder %s1047_s12, 1  ;;  %s1047_s12 = sphi %s1069_s12, %s13_s12  }
   0x2   : > { %p139_p1 = scmp.lt.s32.totalorder %s1047_s12, 3 }
   0x4   : > { %p140_p2 = pnand %p1023_p0, %p139_p1 }
   0x6   : > { %143 = sbr.rel (%p140_p2) target bundleno = 265 (0x109), region = 32 }
   0xb   : > { %v196_v0 = vld [vmem:[%s1731_s1 + $0x78] sm:$0xff]  ;;  %v195_v1 = vld [vmem:[%s1731_s1 + $0x70] sm:$0xff]  ;;  %v194_v2 = vld [vmem:[%s1731_s1 + $0x68] sm:$0xff]  ;;  %s1286_s29 = sshll.u32 %s1019_s13, 1 }
   0xc   : > { %v1086_v3 = vand.u32 4294901760, %v196_v0  ;;  %v1088_v4 = vand.u32 4294901760, %v195_v1  ;;  %v1090_v5 = vand.u32 4294901760, %v194_v2  ;;  %v193_v6 = vld [vmem:[%s1731_s1 + $0x60] sm:$0xff]  ;;  %v192_v7 = vld [vmem:[%s1731_s1 + $0x58] sm:$0xff]  ;;  %v191_v8 = vld [vmem:[%s1731_s1 + $0x50] sm:$0xff] }
   0xd   : > { %v1101_v9 = vand.u32 4294901760, %v193_v6  ;;  %v1103_v10 = vand.u32 4294901760, %v192_v7  ;;  %v1105_v11 = vand.u32 4294901760, %v191_v8  ;;  %v190_v12 = vld [vmem:[%s1731_s1 + $0x48] sm:$0xff]  ;;  %v189_v13 = vld [vmem:[%s1731_s1 + $0x40] sm:$0xff]  ;;  %v188_v18 = vld [vmem:[%s1731_s1 + $0x38] sm:$0xff] }
   0xe   : > { %218 = vmatpush.msra.mxu0 %v1086_v3  ;;  %v1115_v14 = vsub.f32 %v196_v0, %v1086_v3  ;;  %v1118_v15 = vsub.f32 %v195_v1, %v1088_v4  ;;  %431 = vmatpush.msra.mxu3 %v1086_v3  ;;  %v1122_v16 = vsub.f32 %v194_v2, %v1090_v5  ;;  %v1124_v17 = vand.u32 4294901760, %v190_v12  ;;  %v187_v26 = vld [vmem:[%s1731_s1 + $0x30] sm:$0xff]  ;;  %v186_v36 = vld [vmem:[%s1731_s1 + $0x28] sm:$0xff]  ;;  %v185_v42 = vld [vmem:[%s1731_s1 + $0x20] sm:$0xff]  ;;  %p165_p3 = scmp.lt.s32.totalorder %s1286_s29, 3 }
   0xf   : > { %v1130_v19 = vsub.f32 %v193_v6, %v1101_v9  ;;  %v1133_v20 = vsub.f32 %v192_v7, %v1103_v10  ;;  %v1135_v21 = vand.u32 4294901760, %v189_v13  ;;  %v1143_v25 = vsub.f32 %v191_v8, %v1105_v11  ;;  %v184_v48 = vld [vmem:[%s1731_s1 + $0x18] sm:$0xff]  ;;  %v183_v54 = vld [vmem:[%s1731_s1 + $0x10] sm:$0xff]  ;;  %v182_v61 = vld [vmem:[%s1731_s1 + $0x8] sm:$0xff] }
  0x10   : > { %220 = vmatpush.msra.mxu0 %v1088_v4  ;;  %373 = vmatpush.msra.mxu2 %v1115_v14  ;;  %v268_v22 = vand.u32 4294901760, %v1115_v14  ;;  %v274_v23 = vand.u32 4294901760, %v1118_v15  ;;  %v1747_v24 = vand.u32 4294901760, %v1122_v16  ;;  %v1150_v28 = vand.u32 4294901760, %v188_v18  ;;  %v212_v59 = vld [vmem:[%s1731_s1 + $0xf8] sm:$0xff]  ;;  %v211_v2 = vld [vmem:[%s1731_s1 + $0xf0] sm:$0xff] }
  0x11   : > { %433 = vmatpush.msra.mxu3 %v1088_v4  ;;  %v1746_v27 = vand.u32 4294901760, %v1130_v19  ;;  %v1153_v29 = vsub.f32 %v190_v12, %v1124_v17  ;;  %v1743_v33 = vand.u32 4294901760, %v1133_v20  ;;  %v1168_v34 = vand.u32 4294901760, %v187_v26  ;;  %v181_v7 = vld [vmem:[%s1731_s1] sm:$0xff]  ;;  %s1786_s29 = smov (!%p165_p3, %s1286_s29), 3 }
  0x12   : > { %222 = vmatpush.msra.mxu0 %v1090_v5  ;;  %376 = vmatpush.msra.mxu2 %v1118_v15  ;;  %v269_v30 = vsub.f32 %v1115_v14, %v268_v22  ;;  %v275_v31 = vsub.f32 %v1118_v15, %v274_v23  ;;  %v281_v32 = vsub.f32 %v1122_v16, %v1747_v24  ;;  %v1742_v40 = vand.u32 4294901760, %v1143_v25  ;;  %s1031_s14 = sshll.u32 %s1786_s29, 4  ;;  %s1028_s7 = sshll.u32 %s1786_s29, 3 }
  0x13   : > { %435 = vmatpush.msra.mxu3 %v1090_v5  ;;  %v1171_v35 = vsub.f32 %v189_v13, %v1135_v21  ;;  %v287_v39 = vsub.f32 %v1130_v19, %v1746_v27  ;;  %v1741_v41 = vand.u32 4294901760, %v1153_v29  ;;  %v293_v44 = vsub.f32 %v1133_v20, %v1743_v33  ;;  %s1415_s19 = scalar_lea.vmem %s1730_s0, %s1031_s14  ;;  %s175_s10 = scalar_lea.vmem %s1733_s3, %s1028_s7 }
  0x14   : > { %224 = vmatpush.msra.mxu0 %v1101_v9  ;;  %v270_v37 = vand.u32 4294901760, %v269_v30  ;;  %379 = vmatpush.msra.mxu2 %v1122_v16  ;;  %v276_v38 = vand.u32 4294901760, %v275_v31  ;;  %v282_v43 = vand.u32 4294901760, %v281_v32  ;;  %v1191_v45 = vand.u32 4294901760, %v186_v36  ;;  %v210_v30 = vld [vmem:[%s1731_s1 + $0xe8] sm:$0xff] }
  0x15   : > { %437 = vmatpush.msra.mxu3 %v1101_v9  ;;  %v1194_v46 = vsub.f32 %v188_v18, %v1150_v28  ;;  %v1739_v47 = vand.u32 4294901760, %v1171_v35  ;;  %v288_v49 = vand.u32 4294901760, %v287_v39  ;;  %v299_v50 = vsub.f32 %v1143_v25, %v1742_v40 }
  0x16   : > { %226 = vmatpush.msra.mxu0 %v1103_v10  ;;  %271 = vmatpush.msra.mxu1 %v270_v37  ;;  %v1206_v51 = vand.u32 4294901760, %v185_v42  ;;  %v1209_v52 = vsub.f32 %v187_v26, %v1168_v34  ;;  %v305_v53 = vsub.f32 %v1153_v29, %v1741_v41  ;;  %v294_v55 = vand.u32 4294901760, %v293_v44 }
  0x17   : > { %382 = vmatpush.msra.mxu2 %v1130_v19  ;;  %439 = vmatpush.msra.mxu3 %v1103_v10  ;;  %v1220_v56 = vand.u32 4294901760, %v184_v48  ;;  %v1738_v57 = vand.u32 4294901760, %v1194_v46  ;;  %v1224_v58 = vsub.f32 %v186_v36, %v1191_v45  ;;  %v311_v60 = vsub.f32 %v1171_v35, %v1739_v47 }
  0x18   : > { %228 = vmatpush.msra.mxu0 %v1105_v11  ;;  %277 = vmatpush.msra.mxu1 %v276_v38  ;;  %v300_v62 = vand.u32 4294901760, %v299_v50  ;;  %v1238_v63 = vand.u32 4294901760, %v183_v54  ;;  %v1736_v0 = vand.u32 4294901760, %v1209_v52  ;;  %v1242_v1 = vsub.f32 %v185_v42, %v1206_v51  ;;  %v209_v42 = vld [vmem:[%s1731_s1 + $0xe0] sm:$0xff] }
  0x19   : > { %385 = vmatpush.msra.mxu2 %v1133_v20  ;;  %441 = vmatpush.msra.mxu3 %v1105_v11  ;;  %v306_v6 = vand.u32 4294901760, %v305_v53  ;;  %v1252_v8 = vand.u32 4294901760, %v212_v59  ;;  %v317_v12 = vsub.f32 %v1194_v46, %v1738_v57  ;;  %v1258_v13 = vand.u32 4294901760, %v182_v61 }
  0x1a   : > { %230 = vmatpush.msra.mxu0 %v1124_v17  ;;  %283 = vmatpush.msra.mxu1 %v282_v43  ;;  %v1735_v18 = vand.u32 4294901760, %v1224_v58  ;;  %v1262_v26 = vsub.f32 %v184_v48, %v1220_v56  ;;  %v312_v31 = vand.u32 4294901760, %v311_v60  ;;  %v1269_v32 = vand.u32 4294901760, %v211_v2 }
  0x1b   : > { %388 = vmatpush.msra.mxu2 %v1143_v25  ;;  %443 = vmatpush.msra.mxu3 %v1124_v17  ;;  %v323_v36 = vsub.f32 %v1209_v52, %v1736_v0  ;;  %v1275_v37 = vand.u32 4294901760, %v181_v7  ;;  %v1734_v38 = vand.u32 4294901760, %v1242_v1  ;;  %v1279_v39 = vsub.f32 %v183_v54, %v1238_v63 }
  0x1c   : > { %232 = vmatpush.msra.mxu0 %v1135_v21  ;;  %289 = vmatpush.msra.mxu1 %v288_v49  ;;  %v1291_v43 = vsub.f32 %v212_v59, %v1252_v8  ;;  %v1293_v44 = vand.u32 4294901760, %v210_v30  ;;  %v318_v48 = vand.u32 4294901760, %v317_v12  ;;  %v329_v49 = vsub.f32 %v1224_v58, %v1735_v18  ;;  %v208_v59 = vld [vmem:[%s1731_s1 + $0xd8] sm:$0xff] }
  0x1d   : > { %391 = vmatpush.msra.mxu2 %v1153_v29  ;;  %445 = vmatpush.msra.mxu3 %v1135_v21  ;;  %1757 = vst [vmem:[#allocation2_spill] sm:$0xff] %v1275_v37  ;;  %v1737_v50 = vand.u32 4294901760, %v1262_v26  ;;  %v1301_v53 = vsub.f32 %v182_v61, %v1258_v13  ;;  %v1306_v54 = vsub.f32 %v211_v2, %v1269_v32  ;;  %v324_v60 = vand.u32 4294901760, %v323_v36 }
  0x1e   : > { %234 = vmatpush.msra.mxu0 %v1150_v28  ;;  %295 = vmatpush.msra.mxu1 %v294_v55  ;;  %v1308_v55 = vand.u32 4294901760, %v209_v42  ;;  %v335_v61 = vsub.f32 %v1242_v1, %v1734_v38  ;;  %v1320_v2 = vsub.f32 %v181_v7, %v1275_v37  ;;  %v1326_v12 = vsub.f32 %v210_v30, %v1293_v44 }
  0x1f   : > { %394 = vmatpush.msra.mxu2 %v1171_v35  ;;  %447 = vmatpush.msra.mxu3 %v1150_v28  ;;  %v330_v7 = vand.u32 4294901760, %v329_v49  ;;  %v341_v36 = vsub.f32 %v1262_v26, %v1737_v50  ;;  %v1745_v38 = vand.u32 4294901760, %v1301_v53  ;;  %v1336_v18 = vand.u32 4294901760, %v208_v59 }
  0x20   : > { %236 = vmatpush.msra.mxu0 %v1168_v34  ;;  %301 = vmatpush.msra.mxu1 %v300_v62  ;;  %v1740_v62 = vand.u32 4294901760, %v1279_v39  ;;  %v1748_v30 = vand.u32 4294901760, %v1306_v54  ;;  %v1342_v0 = vsub.f32 %v209_v42, %v1308_v55  ;;  %v336_v49 = vand.u32 4294901760, %v335_v61  ;;  %v205_v61 = vld [vmem:[%s1731_s1 + $0xc0] sm:$0xff] }
  0x21   : > { %397 = vmatpush.msra.mxu2 %v1194_v46  ;;  %449 = vmatpush.msra.mxu3 %v1168_v34  ;;  %v1749_v57 = vand.u32 4294901760, %v1320_v2  ;;  %v353_v41 = vsub.f32 %v1301_v53, %v1745_v38  ;;  %v1373_v40 = vsub.f32 %v208_v59, %v1336_v18  ;;  %v1394_v24 = vand.u32 4294901760, %v205_v61 }
  0x22   : > { %238 = vmatpush.msra.mxu0 %v1191_v45  ;;  %307 = vmatpush.msra.mxu1 %v306_v6  ;;  %v1744_v6 = vand.u32 4294901760, %v1291_v43  ;;  %v347_v50 = vsub.f32 %v1279_v39, %v1740_v62  ;;  %v342_v62 = vand.u32 4294901760, %v341_v36  ;;  %v204_v36 = vld [vmem:[%s1731_s1 + $0xb8] sm:$0xff] }
  0x23   : > { %400 = vmatpush.msra.mxu2 %v1209_v52  ;;  %451 = vmatpush.msra.mxu3 %v1191_v45  ;;  %v359_v38 = vsub.f32 %v1320_v2, %v1749_v57  ;;  %v354_v57 = vand.u32 4294901760, %v353_v41  ;;  %v1429_v15 = vsub.f32 %v205_v61, %v1394_v24 }
  0x24   : > { %240 = vmatpush.msra.mxu0 %v1206_v51  ;;  %313 = vmatpush.msra.mxu1 %v312_v31  ;;  %v207_v31 = vld [vmem:[%s1731_s1 + $0xd0] sm:$0xff]  ;;  %v641_v42 = vsub.f32 %v1291_v43, %v1744_v6  ;;  %v647_v6 = vsub.f32 %v1306_v54, %v1748_v30  ;;  %v348_v59 = vand.u32 4294901760, %v347_v50 }
  0x25   : > { %403 = vmatpush.msra.mxu2 %v1224_v58  ;;  %453 = vmatpush.msra.mxu3 %v1206_v51  ;;  %v1357_v47 = vand.u32 4294901760, %v207_v31  ;;  %v203_v50 = vld [vmem:[%s1731_s1 + $0xb0] sm:$0xff] }
  0x26   : > { %242 = vmatpush.msra.mxu0 %v1220_v56  ;;  %319 = vmatpush.msra.mxu1 %v318_v48  ;;  %v206_v48 = vld [vmem:[%s1731_s1 + $0xc8] sm:$0xff]  ;;  %v642_v30 = vand.u32 4294901760, %v641_v42  ;;  %v648_v41 = vand.u32 4294901760, %v647_v6  ;;  %v360_v42 = vand.u32 4294901760, %v359_v38  ;;  %v1758_v6 = vand.u32 4294901760, %v1122_v16 }
  0x27   : > { %406 = vmatpush.msra.mxu2 %v1242_v1  ;;  %455 = vmatpush.msra.mxu3 %v1220_v56  ;;  %v1375_v33 = vand.u32 4294901760, %v206_v48  ;;  %v1392_v27 = vsub.f32 %v207_v31, %v1357_v47  ;;  %v177_v31 = vld [vmem:[%s1415_s19] sm:$0xff]  ;;  %v1760_v16 = vand.u32 4294901760, %v1130_v19 }
  0x28   : > { %244 = vmatpush.msra.mxu0 %v1238_v63  ;;  %325 = vmatpush.msra.mxu1 %v324_v60  ;;  %v1750_v60 = vand.u32 4294901760, %v1326_v12  ;;  %v201_v19 = vld [vmem:[%s1731_s1 + $0xa0] sm:$0xff] }
  0x29   : > { %409 = vmatpush.msra.mxu2 %v1262_v26  ;;  %457 = vmatpush.msra.mxu3 %v1238_v63  ;;  %v1408_v14 = vsub.f32 %v206_v48, %v1375_v33  ;;  %v202_v48 = vld [vmem:[%s1731_s1 + $0xa8] sm:$0xff] }
  0x2a   : > { %246 = vmatpush.msra.mxu0 %v1258_v13  ;;  %331 = vmatpush.msra.mxu1 %v330_v7  ;;  %v1751_v7 = vand.u32 4294901760, %v1342_v0 }
  0x2b   : > { %412 = vmatpush.msra.mxu2 %v1279_v39  ;;  %459 = vmatpush.msra.mxu3 %v1258_v13 }
  0x2c   : > { %248 = vmatpush.msra.mxu0 %v1275_v37  ;;  %337 = vmatpush.msra.mxu1 %v336_v49  ;;  %v653_v49 = vsub.f32 %v1326_v12, %v1750_v60  ;;  %v676_v60 = vand.u32 4294901760, %v1408_v14 }
  0x2d   : > { %415 = vmatpush.msra.mxu2 %v1301_v53  ;;  %461 = vmatpush.msra.mxu3 %v1275_v37  ;;  %v1444_v37 = vand.u32 4294901760, %v202_v48 }
  0x2e   : > { %478 = vmatpush.msrb.mxu0 %v268_v22  ;;  %343 = vmatpush.msra.mxu1 %v342_v62  ;;  %v1410_v22 = vand.u32 4294901760, %v204_v36  ;;  %v659_v62 = vsub.f32 %v1342_v0, %v1751_v7  ;;  %v654_v7 = vand.u32 4294901760, %v653_v49 }
  0x2f   : > { %418 = vmatpush.msra.mxu2 %v1320_v2  ;;  %643 = vmatpush.msrb.mxu3 %v642_v30 }
  0x30   : > { %482 = vmatpush.msrb.mxu0 %v274_v23  ;;  %349 = vmatpush.msra.mxu1 %v348_v59  ;;  %v1431_v23 = vand.u32 4294901760, %v203_v50  ;;  %v1759_v59 = vand.u32 4294901760, %v1373_v40  ;;  %v1442_v61 = vsub.f32 %v204_v36, %v1410_v22  ;;  %v660_v30 = vand.u32 4294901760, %v659_v62 }
  0x31   : > { %590 = vmatpush.msrb.mxu2 %v1252_v8  ;;  %649 = vmatpush.msrb.mxu3 %v648_v41  ;;  %v1456_v36 = vand.u32 4294901760, %v177_v31  ;;  %v1762_v41 = vand.u32 4294901760, %v1133_v20  ;;  %v200_v20 = vld [vmem:[%s1731_s1 + $0x98] sm:$0xff] }
  0x32   : > { %486 = vmatpush.msrb.mxu0 %v1758_v6  ;;  %355 = vmatpush.msra.mxu1 %v354_v57  ;;  %v665_v38 = vsub.f32 %v1373_v40, %v1759_v59  ;;  %v1761_v57 = vand.u32 4294901760, %v1392_v27  ;;  %v1753_v6 = vand.u32 4294901760, %v1429_v15  ;;  %v1454_v59 = vsub.f32 %v203_v50, %v1431_v23 }
  0x33   : > { %592 = vmatpush.msrb.mxu2 %v1269_v32  ;;  %655 = vmatpush.msrb.mxu3 %v654_v7  ;;  %v677_v50 = vsub.f32 %v1408_v14, %v676_v60 }
  0x34   : > { %490 = vmatpush.msrb.mxu0 %v1760_v16  ;;  %361 = vmatpush.msra.mxu1 %v360_v42  ;;  %v671_v49 = vsub.f32 %v1392_v27, %v1761_v57  ;;  %v666_v62 = vand.u32 4294901760, %v665_v38  ;;  %v1756_v42 = vand.u32 4294901760, %v1442_v61  ;;  %v1470_v16 = vsub.f32 %v202_v48, %v1444_v37 }
  0x35   : > { %594 = vmatpush.msrb.mxu2 %v1293_v44  ;;  %v1763_v57 = vand.u32 4294901760, %v1143_v25  ;;  %661 = vmatpush.msrb.mxu3 %v660_v30  ;;  %v683_v48 = vsub.f32 %v1429_v15, %v1753_v6  ;;  %v1754_v38 = vand.u32 4294901760, %v1454_v59  ;;  %v199_v25 = vld [vmem:[%s1731_s1 + $0x90] sm:$0xff]  ;;  %v1494_v30 = vand.u32 4294901760, %v200_v20 }
  0x36   : > { %494 = vmatpush.msrb.mxu0 %v1762_v41  ;;  %549 = vmatpush.msrb.mxu1 %v1086_v3  ;;  %v1478_v3 = vand.u32 4294901760, %v201_v19  ;;  %v672_v7 = vand.u32 4294901760, %v671_v49  ;;  %v1486_v41 = vsub.f32 %v177_v31, %v1456_v36  ;;  %v678_v49 = vand.u32 4294901760, %v677_v50 }
  0x37   : > { %596 = vmatpush.msrb.mxu2 %v1308_v55  ;;  %667 = vmatpush.msrb.mxu3 %v666_v62  ;;  %v689_v31 = vsub.f32 %v1442_v61, %v1756_v42  ;;  %v1765_v6 = vand.u32 4294901760, %v1171_v35  ;;  %v198_v62 = vld [vmem:[%s1731_s1 + $0x88] sm:$0xff]  ;;  %v684_v50 = vand.u32 4294901760, %v683_v48  ;;  %v695_v35 = vsub.f32 %v1454_v59, %v1754_v38 }
  0x38   : > { %498 = vmatpush.msrb.mxu0 %v1763_v57  ;;  %551 = vmatpush.msrb.mxu1 %v1088_v4  ;;  %v1764_v4 = vand.u32 4294901760, %v1153_v29  ;;  %v1755_v57 = vand.u32 4294901760, %v1470_v16  ;;  %v1507_v29 = vand.u32 4294901760, %v199_v25  ;;  %v1528_v38 = vand.u32 4294901760, %v198_v62 }
  0x39   : > { %598 = vmatpush.msrb.mxu2 %v1336_v18  ;;  %673 = vmatpush.msrb.mxu3 %v672_v7  ;;  %v690_v7 = vand.u32 4294901760, %v689_v31  ;;  %v696_v31 = vand.u32 4294901760, %v695_v35  ;;  %v1768_v42 = vand.u32 4294901760, %v1224_v58 }
  0x3a   : > { %502 = vmatpush.msrb.mxu0 %v1764_v4  ;;  %553 = vmatpush.msrb.mxu1 %v1090_v5  ;;  %v1505_v5 = vsub.f32 %v201_v19, %v1478_v3  ;;  %v1766_v19 = vand.u32 4294901760, %v1194_v46  ;;  %v1522_v4 = vsub.f32 %v200_v20, %v1494_v30  ;;  %v701_v48 = vsub.f32 %v1470_v16, %v1755_v57  ;;  %v197_v46 = vld [vmem:[%s1731_s1 + $0x80] sm:$0xff] }
  0x3b   : > { %600 = vmatpush.msrb.mxu2 %v1357_v47  ;;  %679 = vmatpush.msrb.mxu3 %v678_v49  ;;  %v1538_v20 = vsub.f32 %v199_v25, %v1507_v29 }
  0x3c   : > { %506 = vmatpush.msrb.mxu0 %v1765_v6  ;;  %555 = vmatpush.msrb.mxu1 %v1101_v9  ;;  %v251_v6 = vand.u32 4294901760, %v1486_v41  ;;  %v179_v9 = vld [vmem:[%s1415_s19 + $0x10] sm:$0xff]  ;;  %v702_v25 = vand.u32 4294901760, %v701_v48 }
  0x3d   : > { %602 = vmatpush.msrb.mxu2 %v1375_v33  ;;  %v1540_v49 = vand.u32 4294901760, %v179_v9  ;;  %685 = vmatpush.msrb.mxu3 %v684_v50  ;;  %v1769_v50 = vand.u32 4294901760, %v1242_v1  ;;  %v718_v58 = vand.u32 4294901760, %v1538_v20 }
  0x3e   : > { %510 = vmatpush.msrb.mxu0 %v1766_v19  ;;  %557 = vmatpush.msrb.mxu1 %v1103_v10  ;;  %v1767_v19 = vand.u32 4294901760, %v1209_v52  ;;  %v706_v10 = vand.u32 4294901760, %v1505_v5  ;;  %v252_v57 = vsub.f32 %v1486_v41, %v251_v6  ;;  %v1548_v52 = vand.u32 4294901760, %v197_v46 }
  0x3f   : > { %604 = vmatpush.msrb.mxu2 %v1394_v24  ;;  %691 = vmatpush.msrb.mxu3 %v690_v7  ;;  %v178_v7 = vld [vmem:[%s1415_s19 + $0x8] sm:$0xff] }
  0x40   : > { %514 = vmatpush.msrb.mxu0 %v1767_v19  ;;  %559 = vmatpush.msrb.mxu1 %v1105_v11  ;;  %v712_v11 = vand.u32 4294901760, %v1522_v4  ;;  %v1552_v19 = vsub.f32 %v198_v62, %v1528_v38  ;;  %v253_v35 = vand.u32 4294901760, %v252_v57  ;;  %v1770_v62 = vand.u32 4294901760, %v1262_v26 }
  0x41   : > { %606 = vmatpush.msrb.mxu2 %v1410_v22  ;;  %697 = vmatpush.msrb.mxu3 %v696_v31  ;;  %v1570_v1 = vsub.f32 %v197_v46, %v1548_v52  ;;  %v1771_v57 = vand.u32 4294901760, %v1279_v39  ;;  %v1582_v46 = vand.u32 4294901760, %v178_v7 }
  0x42   : > { %518 = vmatpush.msrb.mxu0 %v1768_v42  ;;  %561 = vmatpush.msrb.mxu1 %v1124_v17  ;;  %v707_v17 = vsub.f32 %v1505_v5, %v706_v10  ;;  %v258_v42 = vsub.f32 %v179_v9, %v1540_v49  ;;  %v724_v9 = vand.u32 4294901760, %v1552_v19 }
  0x43   : > { %608 = vmatpush.msrb.mxu2 %v1431_v23  ;;  %703 = vmatpush.msrb.mxu3 %v702_v25  ;;  %v730_v39 = vand.u32 4294901760, %v1570_v1 }
  0x44   : > { %522 = vmatpush.msrb.mxu0 %v1769_v50  ;;  %563 = vmatpush.msrb.mxu1 %v1135_v21  ;;  %v713_v21 = vsub.f32 %v1522_v4, %v712_v11  ;;  %v708_v26 = vand.u32 4294901760, %v707_v17  ;;  %v259_v48 = vand.u32 4294901760, %v258_v42  ;;  %v1597_v50 = vsub.f32 %v178_v7, %v1582_v46 }
  0x45   : > { %610 = vmatpush.msrb.mxu2 %v1444_v37  ;;  %254 = vmatmul.f32.vlgmr.msra.gmra.mxu0 %v253_v35 }
  0x46   : > { %526 = vmatpush.msrb.mxu0 %v1770_v62  ;;  %565 = vmatpush.msrb.mxu1 %v1150_v28  ;;  %v719_v28 = vsub.f32 %v1538_v20, %v718_v58  ;;  %v714_v31 = vand.u32 4294901760, %v713_v21  ;;  %v623_v35 = vand.u32 4294901760, %v1597_v50  ;;  %v1774_v21 = vand.u32 4294901760, %v1291_v43 }
  0x47   : > { %421 = vmatmul.f32.vlgmr.msra.gmra.mxu2 %v1486_v41  ;;  %465 = vmatmul.f32.vlgmr.msra.gmra.mxu3 %v251_v6  ;;  %v1772_v41 = vand.u32 4294901760, %v1301_v53  ;;  %v260_v6 = vsub.f32 %v258_v42, %v259_v48  ;;  %v1773_v53 = vand.u32 4294901760, %v1320_v2 }
  0x48   : > { %530 = vmatpush.msrb.mxu0 %v1771_v57  ;;  %567 = vmatpush.msrb.mxu1 %v1168_v34  ;;  %v725_v34 = vsub.f32 %v1552_v19, %v724_v9  ;;  %v720_v25 = vand.u32 4294901760, %v719_v28 }
  0x49   : > { %612 = vmatpush.msrb.mxu2 %v1478_v3  ;;  %709 = vmatpush.msrb.mxu3 %v708_v26  ;;  %v261_v2 = vand.u32 4294901760, %v260_v6 }
  0x4a   : > { %534 = vmatpush.msrb.mxu0 %v1772_v41  ;;  %569 = vmatpush.msrb.mxu1 %v1191_v45  ;;  %v731_v45 = vsub.f32 %v1570_v1, %v730_v39  ;;  %v726_v17 = vand.u32 4294901760, %v725_v34 }
  0x4b   : > { %614 = vmatpush.msrb.mxu2 %v1494_v30  ;;  %363 = vmatmul.f32.vlgmr.msra.gmra.mxu1 %v1456_v36 }
  0x4c   : > { %538 = vmatpush.msrb.mxu0 %v1773_v53  ;;  %571 = vmatpush.msrb.mxu1 %v1206_v51  ;;  %v180_v51 = vld [vmem:[%s1415_s19 + $0x18] sm:$0xff]  ;;  %v732_v62 = vand.u32 4294901760, %v731_v45 }
  0x4d   : > { %616 = vmatpush.msrb.mxu2 %v1507_v29  ;;  %715 = vmatpush.msrb.mxu3 %v714_v31 }
  0x4e   : > { %745 = vmatpush.msra.mxu0 %v1291_v43  ;;  %573 = vmatpush.msrb.mxu1 %v1220_v56  ;;  %v1612_v56 = vand.u32 4294901760, %v180_v51  ;;  %v1777_v43 = vand.u32 4294901760, %v1326_v12 }
  0x4f   : > { %618 = vmatpush.msrb.mxu2 %v1528_v38  ;;  %721 = vmatpush.msrb.mxu3 %v720_v25 }
  0x50   : > { %748 = vmatpush.msra.mxu0 %v1306_v54  ;;  %426 = vmatmul.f32.gmra.mxu2 %v258_v42  ;;  %v624_v42 = vsub.f32 %v1597_v50, %v623_v35  ;;  %v1625_v7 = vsub.f32 %v180_v51, %v1612_v56 }
  0x51   : > { %575 = vmatpush.msrb.mxu1 %v1238_v63  ;;  %620 = vmatpush.msrb.mxu2 %v1548_v52  ;;  %v1775_v63 = vand.u32 4294901760, %v1306_v54  ;;  %v1778_v54 = vand.u32 4294901760, %v1342_v0 }
  0x52   : > { %727 = vmatpush.msrb.mxu3 %v726_v17  ;;  %751 = vmatpush.msra.mxu0 %v1326_v12  ;;  %v625_v57 = vand.u32 4294901760, %v624_v42  ;;  %v631_v26 = vand.u32 4294901760, %v1625_v7 }
  0x53   : > { %850 = vmatpush.msra.mxu2 %v1774_v21  ;;  %262 = vmatmul.f32.gmra.mxu0 %v261_v2 }
  0x54   : > { %471 = vmatmul.f32.gmra.mxu3 %v259_v48  ;;  %577 = vmatpush.msrb.mxu1 %v1258_v13  ;;  %v1776_v13 = vld [vmem:[#allocation2_spill] sm:$0xff] }
  0x55   : > { %733 = vmatpush.msrb.mxu3 %v732_v62  ;;  %754 = vmatpush.msra.mxu0 %v1342_v0  ;;  %v632_v0 = vsub.f32 %v1625_v7, %v631_v26 }
  0x56   : > { %854 = vmatpush.msra.mxu2 %v1775_v63  ;;  %367 = vmatmul.f32.gmra.mxu1 %v1540_v49 }
  0x57   : > { %921 = vmatpush.msra.mxu3 %v1252_v8  ;;  %757 = vmatpush.msra.mxu0 %v1373_v40 }
  0x58   : > { %579 = vmatpush.msrb.mxu1 %v1776_v13  ;;  %858 = vmatpush.msra.mxu2 %v1777_v43 }
  0x59   : > { %923 = vmatpush.msra.mxu3 %v1269_v32  ;;  %760 = vmatpush.msra.mxu0 %v1392_v27 }
  0x5a   : > { %803 = vmatpush.msra.mxu1 %v1252_v8  ;;  %862 = vmatpush.msra.mxu2 %v1778_v54  ;;  %v1779_v8 = vand.u32 4294901760, %v1373_v40  ;;  %v633_v40 = vand.u32 4294901760, %v632_v0 }
  0x5b   : > { %925 = vmatpush.msra.mxu3 %v1293_v44  ;;  %626 = vmatmul.f32.vlgmr.msrb.gmra.mxu2 %v625_v57 }
  0x5c   : > { %805 = vmatpush.msra.mxu1 %v1269_v32  ;;  %763 = vmatpush.msra.mxu0 %v1408_v14  ;;  %v1780_v32 = vand.u32 4294901760, %v1392_v27  ;;  %v1781_v27 = vand.u32 4294901760, %v1429_v15 }
  0x5d   : > { %866 = vmatpush.msra.mxu2 %v1779_v8  ;;  %927 = vmatpush.msra.mxu3 %v1308_v55 }
  0x5e   : > { %807 = vmatpush.msra.mxu1 %v1293_v44  ;;  %540 = vmatmul.f32.vlgmr.msrb.gmra.mxu0 %v1456_v36  ;;  %v1040_v44 = vld [vmem:[%s1732_s2] ss:$0 sm:$0xff] }
  0x5f   : > { %735 = vmatmul.f32.vlgmr.msrb.gmra.mxu3 %v1582_v46  ;;  %766 = vmatpush.msra.mxu0 %v1429_v15 }
  0x60   : > { %809 = vmatpush.msra.mxu1 %v1308_v55  ;;  %870 = vmatpush.msra.mxu2 %v1780_v32 }
  0x61   : > { %929 = vmatpush.msra.mxu3 %v1336_v18  ;;  %581 = vmatmul.f32.vlgmr.msrb.gmra.mxu1 %v1456_v36 }
  0x62   : > { %769 = vmatpush.msra.mxu0 %v1442_v61  ;;  %811 = vmatpush.msra.mxu1 %v1336_v18  ;;  %v1782_v18 = vand.u32 4294901760, %v1442_v61 }
  0x63   : > { %874 = vmatpush.msra.mxu2 %v676_v60  ;;  %931 = vmatpush.msra.mxu3 %v1357_v47 }
  0x64   : > { %772 = vmatpush.msra.mxu0 %v1454_v59  ;;  %813 = vmatpush.msra.mxu1 %v1357_v47  ;;  %v1783_v47 = vand.u32 4294901760, %v1454_v59 }
  0x65   : > { %878 = vmatpush.msra.mxu2 %v1781_v27  ;;  %933 = vmatpush.msra.mxu3 %v1375_v33 }
  0x66   : > { %634 = vmatmul.f32.gmra.mxu2 %v633_v40  ;;  %775 = vmatpush.msra.mxu0 %v1470_v16 }
  0x67   : > { %815 = vmatpush.msra.mxu1 %v1375_v33  ;;  %882 = vmatpush.msra.mxu2 %v1782_v18  ;;  %v1784_v33 = vand.u32 4294901760, %v1470_v16 }
  0x68   : > { %935 = vmatpush.msra.mxu3 %v1394_v24  ;;  %544 = vmatmul.f32.gmra.mxu0 %v1540_v49 }
  0x69   : > { %739 = vmatmul.f32.gmra.mxu3 %v1612_v56  ;;  %778 = vmatpush.msra.mxu0 %v1505_v5 }
  0x6a   : > { %817 = vmatpush.msra.mxu1 %v1394_v24  ;;  %886 = vmatpush.msra.mxu2 %v1783_v47 }
  0x6b   : > { %937 = vmatpush.msra.mxu3 %v1410_v22  ;;  %585 = vmatmul.f32.gmra.mxu1 %v1540_v49 }
  0x6c   : > { %781 = vmatpush.msra.mxu0 %v1522_v4  ;;  %819 = vmatpush.msra.mxu1 %v1410_v22 }
  0x6d   : > { %890 = vmatpush.msra.mxu2 %v1784_v33  ;;  %939 = vmatpush.msra.mxu3 %v1431_v23 }
  0x6e   : > { %784 = vmatpush.msra.mxu0 %v1538_v20  ;;  %821 = vmatpush.msra.mxu1 %v1431_v23 }
  0x6f   : > { %894 = vmatpush.msra.mxu2 %v706_v10  ;;  %941 = vmatpush.msra.mxu3 %v1444_v37 }
  0x70   : > { %787 = vmatpush.msra.mxu0 %v1552_v19  ;;  %823 = vmatpush.msra.mxu1 %v1444_v37 }
  0x71   : > { %898 = vmatpush.msra.mxu2 %v712_v11  ;;  %943 = vmatpush.msra.mxu3 %v1478_v3 }
  0x72   : > { %790 = vmatpush.msra.mxu0 %v1570_v1  ;;  %825 = vmatpush.msra.mxu1 %v1478_v3 }
  0x73   : > { %902 = vmatpush.msra.mxu2 %v718_v58  ;;  %945 = vmatpush.msra.mxu3 %v1494_v30 }
  0x74   : > { %793 = vmatmul.f32.vlgmr.msra.gmra.mxu0 %v1597_v50  ;;  %827 = vmatpush.msra.mxu1 %v1494_v30 }
  0x75   : > { %906 = vmatpush.msra.mxu2 %v724_v9  ;;  %947 = vmatpush.msra.mxu3 %v1507_v29 }
  0x76   : > { %829 = vmatpush.msra.mxu1 %v1507_v29 }
  0x77   : > { %910 = vmatpush.msra.mxu2 %v730_v39  ;;  %949 = vmatpush.msra.mxu3 %v1528_v38 }
  0x78   : > { %912 = vmatmul.f32.vlgmr.msra.gmra.mxu2 %v1582_v46  ;;  %831 = vmatpush.msra.mxu1 %v1528_v38 }
  0x79   : > { %951 = vmatpush.msra.mxu3 %v1548_v52 }
  0x7a   : > { %953 = vmatmul.f32.vlgmr.msra.gmra.mxu3 %v1582_v46  ;;  %833 = vmatpush.msra.mxu1 %v1548_v52 }
  0x7b   : > { %837 = vmatmul.f32.vlgmr.msra.gmra.mxu1 %v623_v35 }
  0x7c   : > { %798 = vmatmul.f32.gmra.mxu0 %v1625_v7 }
  0x80   : > { %916 = vmatmul.f32.gmra.mxu2 %v1612_v56 }
  0x82   : > { %957 = vmatmul.f32.gmra.mxu3 %v1612_v56 }
  0x83   : > { %843 = vmatmul.f32.gmra.mxu1 %v631_v26 }
  0xc2   : > { %v255_v24 = vpop.f32.mrf.mxu0 }
  0xc3   : > { %v256_v14 = vadd.f32 %v1040_v44, %v255_v24 }
  0xc8   : > { %v364_v37 = vpop.f32.mrf.mxu1 }
  0xc9   : > { %v365_v15 = vadd.f32 %v364_v37, %v256_v14 }
  0xca   : > { %v422_v55 = vpop.f32.mrf.mxu2  ;;  %v466_v60 = vpop.f32.mrf.mxu3 }
  0xcb   : > { %v423_v59 = vadd.f32 %v422_v55, %v365_v15 }
  0xcd   : > { %v467_v3 = vadd.f32 %v466_v60, %v423_v59 }
  0xd0   : > { %v263_v12 = vpop.f32.mrf.mxu0 }
  0xd1   : > { %v264_v36 = vadd.f32 %v1040_v44, %v263_v12 }
  0xd3   : > { %v368_v22 = vpop.f32.mrf.mxu1  ;;  %v427_v23 = vpop.f32.mrf.mxu2 }
  0xd4   : > { %v369_v38 = vadd.f32 %v368_v22, %v264_v36 }
  0xd6   : > { %v428_v5 = vadd.f32 %v427_v23, %v369_v38 }
  0xd7   : > { %v472_v16 = vpop.f32.mrf.mxu3 }
  0xd8   : > { %v473_v49 = vadd.f32 %v472_v16, %v428_v5 }
  0xdb   : > { %v541_v61 = vpop.f32.mrf.mxu0 }
  0xdc   : > { %v542_v29 = vadd.f32 %v541_v61, %v467_v3 }
  0xde   : > { %v582_v30 = vpop.f32.mrf.mxu1  ;;  %v627_v4 = vpop.f32.mrf.mxu2 }
  0xdf   : > { %v583_v11 = vadd.f32 %v582_v30, %v542_v29 }
  0xe1   : > { %v628_v19 = vadd.f32 %v627_v4, %v583_v11 }
  0xe2   : > { %v736_v20 = vpop.f32.mrf.mxu3 }
  0xe3   : > { %v737_v28 = vadd.f32 %v736_v20, %v628_v19 }
  0xe5   : > { %v545_v10 = vpop.f32.mrf.mxu0 }
  0xe6   : > { %v546_v58 = vadd.f32 %v545_v10, %v473_v49 }
  0xe8   : > { %v586_v52 = vpop.f32.mrf.mxu1 }
  0xe9   : > { %v635_v9 = vpop.f32.mrf.mxu2  ;;  %v587_v48 = vadd.f32 %v586_v52, %v546_v58 }
  0xeb   : > { %v636_v39 = vadd.f32 %v635_v9, %v587_v48 }
  0xec   : > { %v740_v46 = vpop.f32.mrf.mxu3 }
  0xed   : > { %v741_v50 = vadd.f32 %v740_v46, %v636_v39 }
  0xf1   : > { %v794_v1 = vpop.f32.mrf.mxu0 }
  0xf2   : > { %v795_v41 = vadd.f32 %v794_v1, %v737_v28 }
  0xf8   : > { %v838_v31 = vpop.f32.mrf.mxu1 }
  0xf9   : > { %v839_v34 = vadd.f32 %v838_v31, %v795_v41  ;;  %v799_v6 = vpop.f32.mrf.mxu0 }
  0xfa   : > { %v800_v2 = vadd.f32 %v799_v6, %v741_v50 }
  0xfb   : > { %v913_v25 = vpop.f32.mrf.mxu2 }
  0xfc   : > { %v914_v53 = vadd.f32 %v913_v25, %v839_v34 }
  0xfd   : > { %v954_v45 = vpop.f32.mrf.mxu3 }
  0xfe   : > { %v955_v17 = vadd.f32 %v954_v45, %v914_v53 }
 0x100   : > { %961 = vst [vmem:[%s175_s10] sm:$0xff] %v955_v17  ;;  %v844_v51 = vpop.f32.mrf.mxu1 }
 0x101   : > { %v845_v35 = vadd.f32 %v844_v51, %v800_v2 }
 0x103   : > { %v917_v62 = vpop.f32.mrf.mxu2 }
 0x104   : > { %v918_v56 = vadd.f32 %v917_v62, %v845_v35 }
 0x105   : > { %v958_v21 = vpop.f32.mrf.mxu3 }
 0x106   : > { %v959_v42 = vadd.f32 %v958_v21, %v918_v56 }
 0x108   : > { %962 = vst [vmem:[%s175_s10 + $0x8] sm:$0xff] %v959_v42 }
 0x109 PF: > { %s13_s12 = sadd.s32 1, %s1047_s12  }
 0x10a   : > { %p10_p4 = scmp.ge.s32.totalorder %s13_s12, 4  }
 0x10c   :  { %12 = sbr.rel (!%p10_p4) target bundleno = 1 (0x1), region = 62 }

</bundles_post_ra>
